<compile_context>
chip_gen: v5e
topology: v5e:2x2
jax: 0.10.0
libtpu: 0.0.40
codegen_flags: <defaults>
</compile_context>

<pallas_src>
import math
import jax
import jax.numpy as jnp
from jax.experimental import pallas as pl
from jax.experimental.pallas import tpu as pltpu

# ---- model / problem sizes (small, consistent with the module) ----
S = 8            # sequence length
B = 2            # batch
D = 32           # d_model
NHEAD = 4        # nhead
HD = D // NHEAD  # head_dim
FF = 64          # dim_feedforward
EPS = 1e-5       # nn.LayerNorm default
BS = B * S
NEG = -1e30      # masked-score fill (avoids -inf arithmetic edge cases)

# packed parameter row layout: (10, FF); rows 0-8 use lanes [:D], row 9 is b1 [:FF]
#   0: bq * 1/sqrt(HD)   1: bk   2: bv   3: bo
#   4: ln1 gamma         5: ln1 beta
#   6: b2 (linear2 bias) 7: ln2 gamma    8: ln2 beta
#   9: b1 (linear1 bias)


def encoder_layer_kernel(x_ref, p_ref,
                         win_ref,    # (2D, 3D) fused in-proj: [[Wq_s|Wk|Wv],[Wq_s|Wk|0]]
                         woT_ref,    # (D, D)
                         w1T_ref,    # (D, FF)
                         w2T_ref,    # (FF, D)
                         pk_ref,     # (10, FF) packed biases / LN params
                         out_ref):   # (B*S, D), s-major rows
    x = x_ref[...]            # (BS, D)
    p = p_ref[...]            # (BS, D)

    pk = pk_ref[...]
    bq, bk, bv, bo = pk[0:1, :D], pk[1:2, :D], pk[2:3, :D], pk[3:4, :D]
    g1, be1 = pk[4:5, :D], pk[5:6, :D]
    b2 = pk[6:7, :D]
    g2, be2 = pk[7:8, :D], pk[8:9, :D]
    b1 = pk[9:10, :FF]

    # --- single fused in-projection: [x | pos] @ W_in ---
    xp = jnp.concatenate([x, p], axis=-1)                                 # (BS, 2D)
    qkv = jnp.dot(xp, win_ref[...], preferred_element_type=jnp.float32)   # (BS, 3D)
    q = qkv[:, :D] + bq          # already scaled by 1/sqrt(HD)
    k = qkv[:, D:2 * D] + bk
    v = qkv[:, 2 * D:] + bv

    # --- attention over all B*S rows with a same-batch mask (rows are s-major,
    #     so row i belongs to batch i % B); masked weights are exactly zero ---
    ri = jax.lax.broadcasted_iota(jnp.int32, (BS, BS), 0) % B
    ci = jax.lax.broadcasted_iota(jnp.int32, (BS, BS), 1) % B
    same_batch = ri == ci

    heads = []
    for h in range(NHEAD):
        lo, hi = h * HD, (h + 1) * HD
        s = jnp.dot(q[:, lo:hi], k[:, lo:hi].T,
                    preferred_element_type=jnp.float32)                   # (BS, BS)
        s = jnp.where(same_batch, s, NEG)
        s = s - jnp.max(s, axis=-1, keepdims=True)
        e = jnp.exp(s)
        a = e * pl.reciprocal(jnp.sum(e, axis=-1, keepdims=True), approx=False)
        heads.append(jnp.dot(a, v[:, lo:hi],
                             preferred_element_type=jnp.float32))         # (BS, HD)
    ctx = jnp.concatenate(heads, axis=-1)                                  # (BS, D)
    attn_out = jnp.dot(ctx, woT_ref[...],
                       preferred_element_type=jnp.float32) + bo            # (BS, D)

    # --- residual + LayerNorm 1 (dropout1 identity in eval) ---
    x1 = x + attn_out
    mu1 = jnp.mean(x1, axis=-1, keepdims=True)
    var1 = jnp.mean((x1 - mu1) ** 2, axis=-1, keepdims=True)
    x1n = (x1 - mu1) * jax.lax.rsqrt(var1 + EPS) * g1 + be1

    # --- feed-forward: linear2(relu(linear1(x)))  (dropout / dropout2 identity) ---
    h1 = jnp.dot(x1n, w1T_ref[...], preferred_element_type=jnp.float32) + b1
    h1 = jnp.maximum(h1, 0.0)
    ff = jnp.dot(h1, w2T_ref[...], preferred_element_type=jnp.float32) + b2

    # --- residual + LayerNorm 2 ---
    x2 = x1n + ff
    mu2 = jnp.mean(x2, axis=-1, keepdims=True)
    var2 = jnp.mean((x2 - mu2) ** 2, axis=-1, keepdims=True)
    out_ref[...] = (x2 - mu2) * jax.lax.rsqrt(var2 + EPS) * g2 + be2


def prepare_params(p):
    """One-time parameter fusion: fold 1/sqrt(HD) into Wq/bq, build the (2D,3D)
    fused [x|pos] in-projection weight, and pack all small vectors into (10, FF)."""
    scale = 1.0 / math.sqrt(HD)
    wqT_s = p["wqT"] * scale
    bq_s = p["bq"] * scale
    zero = jnp.zeros((D, D), jnp.float32)
    win = jnp.concatenate([
        jnp.concatenate([wqT_s, p["wkT"], p["wvT"]], axis=1),   # x contribution
        jnp.concatenate([wqT_s, p["wkT"], zero], axis=1),       # pos contribution (no V)
    ], axis=0)                                                  # (2D, 3D)

    def pad(r):  # (1, D) -> (1, FF)
        return jnp.pad(r, ((0, 0), (0, FF - D)))

    packed = jnp.concatenate(
        [pad(bq_s), pad(p["bk"]), pad(p["bv"]), pad(p["bo"]),
         pad(p["g1"]), pad(p["be1"]), pad(p["b2"]), pad(p["g2"]), pad(p["be2"]),
         p["b1"]], axis=0)                                      # (10, FF)
    return {"win": win, "woT": p["woT"], "w1T": p["w1T"], "w2T": p["w2T"],
            "packed": packed}


@jax.jit
def transformer_encoder_layer(src_sbd, pos_sbd, fp):
    """src_sbd, pos_sbd: (S, B, D) float32 — PyTorch seq-first convention."""
    # Contiguous, layout-preserving reshapes (no transposes / data movement).
    x = src_sbd.reshape(BS, D)
    pe = pos_sbd.reshape(BS, D)

    vmem = pl.BlockSpec(memory_space=pltpu.MemorySpace.VMEM)
    out = pl.pallas_call(
        encoder_layer_kernel,
        out_shape=jax.ShapeDtypeStruct((BS, D), jnp.float32),
        in_specs=[vmem] * 7,
        out_specs=vmem,
    )(x, pe, fp["win"], fp["woT"], fp["w1T"], fp["w2T"], fp["packed"])

    return out.reshape(S, B, D)


def reference_jax(src_sbd, pos_sbd, p):
    """Pure-JAX reference mirroring PyTorch forward_post semantics (eval mode),
    using the raw (unfused) parameters."""
    x = jnp.transpose(src_sbd, (1, 0, 2))   # (B, S, D)
    pe = jnp.transpose(pos_sbd, (1, 0, 2))
    qk_in = x + pe
    q = qk_in @ p["wqT"] + p["bq"]
    k = qk_in @ p["wkT"] + p["bk"]
    v = x @ p["wvT"] + p["bv"]

    def split(t):  # (B, S, D) -> (B, NHEAD, S, HD)
        return jnp.transpose(t.reshape(B, S, NHEAD, HD), (0, 2, 1, 3))

    qh, kh, vh = split(q) / math.sqrt(HD), split(k), split(v)
    s = jnp.einsum("bhqd,bhkd->bhqk", qh, kh)
    a = jax.nn.softmax(s, axis=-1)
    o = jnp.einsum("bhqk,bhkd->bhqd", a, vh)
    attn = jnp.transpose(o, (0, 2, 1, 3)).reshape(B, S, D)
    attn = attn @ p["woT"] + p["bo"]

    def ln(t, g, b):
        mu = jnp.mean(t, axis=-1, keepdims=True)
        var = jnp.mean((t - mu) ** 2, axis=-1, keepdims=True)
        return (t - mu) * jax.lax.rsqrt(var + EPS) * g + b

    x1 = ln(x + attn, p["g1"], p["be1"])
    ff = jnp.maximum(x1 @ p["w1T"] + p["b1"], 0.0) @ p["w2T"] + p["b2"]
    x2 = ln(x1 + ff, p["g2"], p["be2"])
    return jnp.transpose(x2, (1, 0, 2))


if __name__ == "__main__":
    key = jax.random.PRNGKey(0)
    keys = jax.random.split(key, 16)

    def init(k, shape, scale=0.1):
        return (scale * jax.random.normal(k, shape)).astype(jnp.float32)

    # nn.MultiheadAttention: in_proj_weight (3D, D), in_proj_bias (3D,),
    # out_proj (D, D) + (D,). We store transposed weights for x @ W^T.
    params = {
        "wqT": init(keys[0], (D, D)),  "bq": init(keys[1], (1, D)),
        "wkT": init(keys[2], (D, D)),  "bk": init(keys[3], (1, D)),
        "wvT": init(keys[4], (D, D)),  "bv": init(keys[5], (1, D)),
        "woT": init(keys[6], (D, D)),  "bo": init(keys[7], (1, D)),
        "g1": jnp.ones((1, D), jnp.float32),  "be1": jnp.zeros((1, D), jnp.float32),
        "w1T": init(keys[8], (D, FF)), "b1": init(keys[9], (1, FF)),
        "w2T": init(keys[10], (FF, D)), "b2": init(keys[11], (1, D)),
        "g2": jnp.ones((1, D), jnp.float32),  "be2": jnp.zeros((1, D), jnp.float32),
    }

    fused = prepare_params(params)   # one-time weight fusion / scale folding

    src = init(keys[12], (S, B, D), scale=1.0)   # (seq, batch, d_model)
    pos = init(keys[13], (S, B, D), scale=1.0)

    out = jax.block_until_ready(transformer_encoder_layer(src, pos, fused))
    ref = jax.block_until_ready(reference_jax(src, pos, params))

    assert out.shape == (S, B, D)
    assert jnp.allclose(out, ref, atol=2e-4, rtol=2e-4), "mismatch vs reference"
    print("KERNEL_OK")
</pallas_src>

<mosaic_0001>
module attributes {stable_mosaic.version = 11 : i64} {
  func.func @encoder_layer_kernel(%arg0: memref<16x32xf32, #tpu.memory_space<vmem>>, %arg1: memref<16x32xf32, #tpu.memory_space<vmem>>, %arg2: memref<64x96xf32, #tpu.memory_space<vmem>>, %arg3: memref<32x32xf32, #tpu.memory_space<vmem>>, %arg4: memref<32x64xf32, #tpu.memory_space<vmem>>, %arg5: memref<64x32xf32, #tpu.memory_space<vmem>>, %arg6: memref<10x64xf32, #tpu.memory_space<vmem>>, %arg7: memref<16x32xf32, #tpu.memory_space<vmem>>) attributes {dimension_semantics = [], scalar_prefetch = 0 : i64, scratch_operands = 0 : i64, tpu.core_type = #tpu.core_type<tc>} {
    %c0 = arith.constant 0 : index
    %c0_0 = arith.constant 0 : index
    %0 = vector.load %arg0[%c0, %c0_0] : memref<16x32xf32, #tpu.memory_space<vmem>>, vector<16x32xf32>
    %c0_1 = arith.constant 0 : index
    %c0_2 = arith.constant 0 : index
    %1 = vector.load %arg1[%c0_1, %c0_2] : memref<16x32xf32, #tpu.memory_space<vmem>>, vector<16x32xf32>
    %c0_3 = arith.constant 0 : index
    %c0_4 = arith.constant 0 : index
    %2 = vector.load %arg6[%c0_3, %c0_4] : memref<10x64xf32, #tpu.memory_space<vmem>>, vector<10x64xf32>
    %3 = vector.extract_strided_slice %2 {offsets = [0, 0], sizes = [1, 32], strides = [1, 1]} : vector<10x64xf32> to vector<1x32xf32>
    %4 = vector.extract_strided_slice %2 {offsets = [1, 0], sizes = [1, 32], strides = [1, 1]} : vector<10x64xf32> to vector<1x32xf32>
    %5 = vector.extract_strided_slice %2 {offsets = [2, 0], sizes = [1, 32], strides = [1, 1]} : vector<10x64xf32> to vector<1x32xf32>
    %6 = vector.extract_strided_slice %2 {offsets = [3, 0], sizes = [1, 32], strides = [1, 1]} : vector<10x64xf32> to vector<1x32xf32>
    %7 = vector.extract_strided_slice %2 {offsets = [4, 0], sizes = [1, 32], strides = [1, 1]} : vector<10x64xf32> to vector<1x32xf32>
    %8 = vector.extract_strided_slice %2 {offsets = [5, 0], sizes = [1, 32], strides = [1, 1]} : vector<10x64xf32> to vector<1x32xf32>
    %9 = vector.extract_strided_slice %2 {offsets = [6, 0], sizes = [1, 32], strides = [1, 1]} : vector<10x64xf32> to vector<1x32xf32>
    %10 = vector.extract_strided_slice %2 {offsets = [7, 0], sizes = [1, 32], strides = [1, 1]} : vector<10x64xf32> to vector<1x32xf32>
    %11 = vector.extract_strided_slice %2 {offsets = [8, 0], sizes = [1, 32], strides = [1, 1]} : vector<10x64xf32> to vector<1x32xf32>
    %12 = vector.extract_strided_slice %2 {offsets = [9, 0], sizes = [1, 64], strides = [1, 1]} : vector<10x64xf32> to vector<1x64xf32>
    %13 = tpu.concatenate %0, %1 in 1 : vector<16x32xf32>, vector<16x32xf32> -> vector<16x64xf32>
    %c0_5 = arith.constant 0 : index
    %c0_6 = arith.constant 0 : index
    %14 = vector.load %arg2[%c0_5, %c0_6] : memref<64x96xf32, #tpu.memory_space<vmem>>, vector<64x96xf32>
    %cst = arith.constant dense<0.000000e+00> : vector<16x96xf32>
    %15 = tpu.matmul %13, %14, %cst {dimension_numbers = #tpu.dot_dimension_numbers<[1], [0], [0], [1], [0, 0, 1, 1], [], []>} : vector<16x64xf32>, vector<64x96xf32>, vector<16x96xf32> -> vector<16x96xf32>
    %16 = vector.extract_strided_slice %15 {offsets = [0, 0], sizes = [16, 32], strides = [1, 1]} : vector<16x96xf32> to vector<16x32xf32>
    %17 = vector.broadcast %3 : vector<1x32xf32> to vector<16x32xf32>
    %18 = arith.addf %16, %17 : vector<16x32xf32>
    %19 = vector.extract_strided_slice %15 {offsets = [0, 32], sizes = [16, 32], strides = [1, 1]} : vector<16x96xf32> to vector<16x32xf32>
    %20 = vector.broadcast %4 : vector<1x32xf32> to vector<16x32xf32>
    %21 = arith.addf %19, %20 : vector<16x32xf32>
    %22 = vector.extract_strided_slice %15 {offsets = [0, 64], sizes = [16, 32], strides = [1, 1]} : vector<16x96xf32> to vector<16x32xf32>
    %23 = vector.broadcast %5 : vector<1x32xf32> to vector<16x32xf32>
    %24 = arith.addf %22, %23 : vector<16x32xf32>
    %25 = tpu.iota {dimensions = array<i32: 0>} : vector<16x16xi32>
    %c2_i32 = arith.constant 2 : i32
    %c0_i32 = arith.constant 0 : i32
    %26 = arith.cmpi eq, %c2_i32, %c0_i32 : i32
    %c1_i32 = arith.constant 1 : i32
    %27 = arith.select %26, %c1_i32, %c2_i32 : i32
    %28 = vector.broadcast %27 : i32 to vector<16x16xi32>
    %29 = arith.remsi %25, %28 : vector<16x16xi32>
    %c0_i32_7 = arith.constant 0 : i32
    %30 = vector.broadcast %c0_i32_7 : i32 to vector<16x16xi32>
    %31 = arith.cmpi ne, %29, %30 : vector<16x16xi32>
    %c0_i32_8 = arith.constant 0 : i32
    %32 = vector.broadcast %c0_i32_8 : i32 to vector<16x16xi32>
    %33 = arith.cmpi slt, %29, %32 : vector<16x16xi32>
    %c0_i32_9 = arith.constant 0 : i32
    %34 = arith.cmpi slt, %27, %c0_i32_9 : i32
    %35 = vector.broadcast %34 : i1 to vector<16x16xi1>
    %36 = vector.broadcast %35 : vector<16x16xi1> to vector<16x16xi1>
    %37 = arith.xori %33, %36 : vector<16x16xi1>
    %38 = arith.andi %37, %31 : vector<16x16xi1>
    %39 = vector.broadcast %27 : i32 to vector<16x16xi32>
    %40 = arith.addi %29, %39 : vector<16x16xi32>
    %41 = arith.select %38, %40, %29 : vector<16x16xi1>, vector<16x16xi32>
    %42 = tpu.iota {dimensions = array<i32: 1>} : vector<16x16xi32>
    %c2_i32_10 = arith.constant 2 : i32
    %c0_i32_11 = arith.constant 0 : i32
    %43 = arith.cmpi eq, %c2_i32_10, %c0_i32_11 : i32
    %c1_i32_12 = arith.constant 1 : i32
    %44 = arith.select %43, %c1_i32_12, %c2_i32_10 : i32
    %45 = vector.broadcast %44 : i32 to vector<16x16xi32>
    %46 = arith.remsi %42, %45 : vector<16x16xi32>
    %c0_i32_13 = arith.constant 0 : i32
    %47 = vector.broadcast %c0_i32_13 : i32 to vector<16x16xi32>
    %48 = arith.cmpi ne, %46, %47 : vector<16x16xi32>
    %c0_i32_14 = arith.constant 0 : i32
    %49 = vector.broadcast %c0_i32_14 : i32 to vector<16x16xi32>
    %50 = arith.cmpi slt, %46, %49 : vector<16x16xi32>
    %c0_i32_15 = arith.constant 0 : i32
    %51 = arith.cmpi slt, %44, %c0_i32_15 : i32
    %52 = vector.broadcast %51 : i1 to vector<16x16xi1>
    %53 = vector.broadcast %52 : vector<16x16xi1> to vector<16x16xi1>
    %54 = arith.xori %50, %53 : vector<16x16xi1>
    %55 = arith.andi %54, %48 : vector<16x16xi1>
    %56 = vector.broadcast %44 : i32 to vector<16x16xi32>
    %57 = arith.addi %46, %56 : vector<16x16xi32>
    %58 = arith.select %55, %57, %46 : vector<16x16xi1>, vector<16x16xi32>
    %59 = arith.cmpi eq, %41, %58 : vector<16x16xi32>
    %60 = vector.extract_strided_slice %18 {offsets = [0, 0], sizes = [16, 8], strides = [1, 1]} : vector<16x32xf32> to vector<16x8xf32>
    %61 = vector.extract_strided_slice %21 {offsets = [0, 0], sizes = [16, 8], strides = [1, 1]} : vector<16x32xf32> to vector<16x8xf32>
    %62 = tpu.transpose %61, [1, 0] : vector<16x8xf32> -> vector<8x16xf32>
    %cst_16 = arith.constant dense<0.000000e+00> : vector<16x16xf32>
    %63 = tpu.matmul %60, %62, %cst_16 {dimension_numbers = #tpu.dot_dimension_numbers<[1], [0], [0], [1], [0, 0, 1, 1], [], []>} : vector<16x8xf32>, vector<8x16xf32>, vector<16x16xf32> -> vector<16x16xf32>
    %cst_17 = arith.constant -1.000000e+30 : f32
    %64 = vector.broadcast %cst_17 : f32 to vector<16x16xf32>
    %65 = arith.select %59, %63, %64 : vector<16x16xi1>, vector<16x16xf32>
    %cst_18 = arith.constant dense<0xFF800000> : vector<16xf32>
    %66 = vector.multi_reduction <maximumf>, %65, %cst_18 [1] : vector<16x16xf32> to vector<16xf32>
    %67 = vector.shape_cast %66 : vector<16xf32> to vector<16x1xf32>
    %68 = vector.broadcast %67 : vector<16x1xf32> to vector<16x16xf32>
    %69 = arith.subf %65, %68 : vector<16x16xf32>
    %70 = math.exp %69 : vector<16x16xf32>
    %cst_19 = arith.constant dense<0.000000e+00> : vector<16xf32>
    %71 = vector.multi_reduction <add>, %70, %cst_19 [1] : vector<16x16xf32> to vector<16xf32>
    %72 = vector.shape_cast %71 : vector<16xf32> to vector<16x1xf32>
    %73 = tpu.reciprocal %72 : vector<16x1xf32> -> vector<16x1xf32>
    %74 = vector.broadcast %73 : vector<16x1xf32> to vector<16x16xf32>
    %75 = arith.mulf %70, %74 : vector<16x16xf32>
    %76 = vector.extract_strided_slice %24 {offsets = [0, 0], sizes = [16, 8], strides = [1, 1]} : vector<16x32xf32> to vector<16x8xf32>
    %cst_20 = arith.constant dense<0.000000e+00> : vector<16x8xf32>
    %77 = tpu.matmul %75, %76, %cst_20 {dimension_numbers = #tpu.dot_dimension_numbers<[1], [0], [0], [1], [0, 0, 1, 1], [], []>} : vector<16x16xf32>, vector<16x8xf32>, vector<16x8xf32> -> vector<16x8xf32>
    %78 = vector.extract_strided_slice %18 {offsets = [0, 8], sizes = [16, 8], strides = [1, 1]} : vector<16x32xf32> to vector<16x8xf32>
    %79 = vector.extract_strided_slice %21 {offsets = [0, 8], sizes = [16, 8], strides = [1, 1]} : vector<16x32xf32> to vector<16x8xf32>
    %80 = tpu.transpose %79, [1, 0] : vector<16x8xf32> -> vector<8x16xf32>
    %cst_21 = arith.constant dense<0.000000e+00> : vector<16x16xf32>
    %81 = tpu.matmul %78, %80, %cst_21 {dimension_numbers = #tpu.dot_dimension_numbers<[1], [0], [0], [1], [0, 0, 1, 1], [], []>} : vector<16x8xf32>, vector<8x16xf32>, vector<16x16xf32> -> vector<16x16xf32>
    %cst_22 = arith.constant -1.000000e+30 : f32
    %82 = vector.broadcast %cst_22 : f32 to vector<16x16xf32>
    %83 = arith.select %59, %81, %82 : vector<16x16xi1>, vector<16x16xf32>
    %cst_23 = arith.constant dense<0xFF800000> : vector<16xf32>
    %84 = vector.multi_reduction <maximumf>, %83, %cst_23 [1] : vector<16x16xf32> to vector<16xf32>
    %85 = vector.shape_cast %84 : vector<16xf32> to vector<16x1xf32>
    %86 = vector.broadcast %85 : vector<16x1xf32> to vector<16x16xf32>
    %87 = arith.subf %83, %86 : vector<16x16xf32>
    %88 = math.exp %87 : vector<16x16xf32>
    %cst_24 = arith.constant dense<0.000000e+00> : vector<16xf32>
    %89 = vector.multi_reduction <add>, %88, %cst_24 [1] : vector<16x16xf32> to vector<16xf32>
    %90 = vector.shape_cast %89 : vector<16xf32> to vector<16x1xf32>
    %91 = tpu.reciprocal %90 : vector<16x1xf32> -> vector<16x1xf32>
    %92 = vector.broadcast %91 : vector<16x1xf32> to vector<16x16xf32>
    %93 = arith.mulf %88, %92 : vector<16x16xf32>
    %94 = vector.extract_strided_slice %24 {offsets = [0, 8], sizes = [16, 8], strides = [1, 1]} : vector<16x32xf32> to vector<16x8xf32>
    %cst_25 = arith.constant dense<0.000000e+00> : vector<16x8xf32>
    %95 = tpu.matmul %93, %94, %cst_25 {dimension_numbers = #tpu.dot_dimension_numbers<[1], [0], [0], [1], [0, 0, 1, 1], [], []>} : vector<16x16xf32>, vector<16x8xf32>, vector<16x8xf32> -> vector<16x8xf32>
    %96 = vector.extract_strided_slice %18 {offsets = [0, 16], sizes = [16, 8], strides = [1, 1]} : vector<16x32xf32> to vector<16x8xf32>
    %97 = vector.extract_strided_slice %21 {offsets = [0, 16], sizes = [16, 8], strides = [1, 1]} : vector<16x32xf32> to vector<16x8xf32>
    %98 = tpu.transpose %97, [1, 0] : vector<16x8xf32> -> vector<8x16xf32>
    %cst_26 = arith.constant dense<0.000000e+00> : vector<16x16xf32>
    %99 = tpu.matmul %96, %98, %cst_26 {dimension_numbers = #tpu.dot_dimension_numbers<[1], [0], [0], [1], [0, 0, 1, 1], [], []>} : vector<16x8xf32>, vector<8x16xf32>, vector<16x16xf32> -> vector<16x16xf32>
    %cst_27 = arith.constant -1.000000e+30 : f32
    %100 = vector.broadcast %cst_27 : f32 to vector<16x16xf32>
    %101 = arith.select %59, %99, %100 : vector<16x16xi1>, vector<16x16xf32>
    %cst_28 = arith.constant dense<0xFF800000> : vector<16xf32>
    %102 = vector.multi_reduction <maximumf>, %101, %cst_28 [1] : vector<16x16xf32> to vector<16xf32>
    %103 = vector.shape_cast %102 : vector<16xf32> to vector<16x1xf32>
    %104 = vector.broadcast %103 : vector<16x1xf32> to vector<16x16xf32>
    %105 = arith.subf %101, %104 : vector<16x16xf32>
    %106 = math.exp %105 : vector<16x16xf32>
    %cst_29 = arith.constant dense<0.000000e+00> : vector<16xf32>
    %107 = vector.multi_reduction <add>, %106, %cst_29 [1] : vector<16x16xf32> to vector<16xf32>
    %108 = vector.shape_cast %107 : vector<16xf32> to vector<16x1xf32>
    %109 = tpu.reciprocal %108 : vector<16x1xf32> -> vector<16x1xf32>
    %110 = vector.broadcast %109 : vector<16x1xf32> to vector<16x16xf32>
    %111 = arith.mulf %106, %110 : vector<16x16xf32>
    %112 = vector.extract_strided_slice %24 {offsets = [0, 16], sizes = [16, 8], strides = [1, 1]} : vector<16x32xf32> to vector<16x8xf32>
    %cst_30 = arith.constant dense<0.000000e+00> : vector<16x8xf32>
    %113 = tpu.matmul %111, %112, %cst_30 {dimension_numbers = #tpu.dot_dimension_numbers<[1], [0], [0], [1], [0, 0, 1, 1], [], []>} : vector<16x16xf32>, vector<16x8xf32>, vector<16x8xf32> -> vector<16x8xf32>
    %114 = vector.extract_strided_slice %18 {offsets = [0, 24], sizes = [16, 8], strides = [1, 1]} : vector<16x32xf32> to vector<16x8xf32>
    %115 = vector.extract_strided_slice %21 {offsets = [0, 24], sizes = [16, 8], strides = [1, 1]} : vector<16x32xf32> to vector<16x8xf32>
    %116 = tpu.transpose %115, [1, 0] : vector<16x8xf32> -> vector<8x16xf32>
    %cst_31 = arith.constant dense<0.000000e+00> : vector<16x16xf32>
    %117 = tpu.matmul %114, %116, %cst_31 {dimension_numbers = #tpu.dot_dimension_numbers<[1], [0], [0], [1], [0, 0, 1, 1], [], []>} : vector<16x8xf32>, vector<8x16xf32>, vector<16x16xf32> -> vector<16x16xf32>
    %cst_32 = arith.constant -1.000000e+30 : f32
    %118 = vector.broadcast %cst_32 : f32 to vector<16x16xf32>
    %119 = arith.select %59, %117, %118 : vector<16x16xi1>, vector<16x16xf32>
    %cst_33 = arith.constant dense<0xFF800000> : vector<16xf32>
    %120 = vector.multi_reduction <maximumf>, %119, %cst_33 [1] : vector<16x16xf32> to vector<16xf32>
    %121 = vector.shape_cast %120 : vector<16xf32> to vector<16x1xf32>
    %122 = vector.broadcast %121 : vector<16x1xf32> to vector<16x16xf32>
    %123 = arith.subf %119, %122 : vector<16x16xf32>
    %124 = math.exp %123 : vector<16x16xf32>
    %cst_34 = arith.constant dense<0.000000e+00> : vector<16xf32>
    %125 = vector.multi_reduction <add>, %124, %cst_34 [1] : vector<16x16xf32> to vector<16xf32>
    %126 = vector.shape_cast %125 : vector<16xf32> to vector<16x1xf32>
    %127 = tpu.reciprocal %126 : vector<16x1xf32> -> vector<16x1xf32>
    %128 = vector.broadcast %127 : vector<16x1xf32> to vector<16x16xf32>
    %129 = arith.mulf %124, %128 : vector<16x16xf32>
    %130 = vector.extract_strided_slice %24 {offsets = [0, 24], sizes = [16, 8], strides = [1, 1]} : vector<16x32xf32> to vector<16x8xf32>
    %cst_35 = arith.constant dense<0.000000e+00> : vector<16x8xf32>
    %131 = tpu.matmul %129, %130, %cst_35 {dimension_numbers = #tpu.dot_dimension_numbers<[1], [0], [0], [1], [0, 0, 1, 1], [], []>} : vector<16x16xf32>, vector<16x8xf32>, vector<16x8xf32> -> vector<16x8xf32>
    %132 = tpu.concatenate %77, %95, %113, %131 in 1 : vector<16x8xf32>, vector<16x8xf32>, vector<16x8xf32>, vector<16x8xf32> -> vector<16x32xf32>
    %c0_36 = arith.constant 0 : index
    %c0_37 = arith.constant 0 : index
    %133 = vector.load %arg3[%c0_36, %c0_37] : memref<32x32xf32, #tpu.memory_space<vmem>>, vector<32x32xf32>
    %cst_38 = arith.constant dense<0.000000e+00> : vector<16x32xf32>
    %134 = tpu.matmul %132, %133, %cst_38 {dimension_numbers = #tpu.dot_dimension_numbers<[1], [0], [0], [1], [0, 0, 1, 1], [], []>} : vector<16x32xf32>, vector<32x32xf32>, vector<16x32xf32> -> vector<16x32xf32>
    %135 = vector.broadcast %6 : vector<1x32xf32> to vector<16x32xf32>
    %136 = arith.addf %134, %135 : vector<16x32xf32>
    %137 = arith.addf %0, %136 : vector<16x32xf32>
    %cst_39 = arith.constant dense<0.000000e+00> : vector<16xf32>
    %138 = vector.multi_reduction <add>, %137, %cst_39 [1] : vector<16x32xf32> to vector<16xf32>
    %139 = vector.shape_cast %138 : vector<16xf32> to vector<16x1xf32>
    %cst_40 = arith.constant 3.200000e+01 : f32
    %140 = vector.broadcast %cst_40 : f32 to vector<16x1xf32>
    %141 = arith.divf %139, %140 : vector<16x1xf32>
    %142 = vector.broadcast %141 : vector<16x1xf32> to vector<16x32xf32>
    %143 = arith.subf %137, %142 : vector<16x32xf32>
    %144 = arith.mulf %143, %143 : vector<16x32xf32>
    %cst_41 = arith.constant dense<0.000000e+00> : vector<16xf32>
    %145 = vector.multi_reduction <add>, %144, %cst_41 [1] : vector<16x32xf32> to vector<16xf32>
    %146 = vector.shape_cast %145 : vector<16xf32> to vector<16x1xf32>
    %cst_42 = arith.constant 3.200000e+01 : f32
    %147 = vector.broadcast %cst_42 : f32 to vector<16x1xf32>
    %148 = arith.divf %146, %147 : vector<16x1xf32>
    %149 = vector.broadcast %141 : vector<16x1xf32> to vector<16x32xf32>
    %150 = arith.subf %137, %149 : vector<16x32xf32>
    %cst_43 = arith.constant 9.99999974E-6 : f32
    %151 = vector.broadcast %cst_43 : f32 to vector<16x1xf32>
    %152 = arith.addf %148, %151 : vector<16x1xf32>
    %153 = math.rsqrt %152 : vector<16x1xf32>
    %154 = vector.broadcast %153 : vector<16x1xf32> to vector<16x32xf32>
    %155 = arith.mulf %150, %154 : vector<16x32xf32>
    %156 = vector.broadcast %7 : vector<1x32xf32> to vector<16x32xf32>
    %157 = arith.mulf %155, %156 : vector<16x32xf32>
    %158 = vector.broadcast %8 : vector<1x32xf32> to vector<16x32xf32>
    %159 = arith.addf %157, %158 : vector<16x32xf32>
    %c0_44 = arith.constant 0 : index
    %c0_45 = arith.constant 0 : index
    %160 = vector.load %arg4[%c0_44, %c0_45] : memref<32x64xf32, #tpu.memory_space<vmem>>, vector<32x64xf32>
    %cst_46 = arith.constant dense<0.000000e+00> : vector<16x64xf32>
    %161 = tpu.matmul %159, %160, %cst_46 {dimension_numbers = #tpu.dot_dimension_numbers<[1], [0], [0], [1], [0, 0, 1, 1], [], []>} : vector<16x32xf32>, vector<32x64xf32>, vector<16x64xf32> -> vector<16x64xf32>
    %162 = vector.broadcast %12 : vector<1x64xf32> to vector<16x64xf32>
    %163 = arith.addf %161, %162 : vector<16x64xf32>
    %cst_47 = arith.constant 0.000000e+00 : f32
    %164 = vector.broadcast %cst_47 : f32 to vector<16x64xf32>
    %165 = arith.maximumf %163, %164 : vector<16x64xf32>
    %c0_48 = arith.constant 0 : index
    %c0_49 = arith.constant 0 : index
    %166 = vector.load %arg5[%c0_48, %c0_49] : memref<64x32xf32, #tpu.memory_space<vmem>>, vector<64x32xf32>
    %cst_50 = arith.constant dense<0.000000e+00> : vector<16x32xf32>
    %167 = tpu.matmul %165, %166, %cst_50 {dimension_numbers = #tpu.dot_dimension_numbers<[1], [0], [0], [1], [0, 0, 1, 1], [], []>} : vector<16x64xf32>, vector<64x32xf32>, vector<16x32xf32> -> vector<16x32xf32>
    %168 = vector.broadcast %9 : vector<1x32xf32> to vector<16x32xf32>
    %169 = arith.addf %167, %168 : vector<16x32xf32>
    %170 = arith.addf %159, %169 : vector<16x32xf32>
    %cst_51 = arith.constant dense<0.000000e+00> : vector<16xf32>
    %171 = vector.multi_reduction <add>, %170, %cst_51 [1] : vector<16x32xf32> to vector<16xf32>
    %172 = vector.shape_cast %171 : vector<16xf32> to vector<16x1xf32>
    %cst_52 = arith.constant 3.200000e+01 : f32
    %173 = vector.broadcast %cst_52 : f32 to vector<16x1xf32>
    %174 = arith.divf %172, %173 : vector<16x1xf32>
    %175 = vector.broadcast %174 : vector<16x1xf32> to vector<16x32xf32>
    %176 = arith.subf %170, %175 : vector<16x32xf32>
    %177 = arith.mulf %176, %176 : vector<16x32xf32>
    %cst_53 = arith.constant dense<0.000000e+00> : vector<16xf32>
    %178 = vector.multi_reduction <add>, %177, %cst_53 [1] : vector<16x32xf32> to vector<16xf32>
    %179 = vector.shape_cast %178 : vector<16xf32> to vector<16x1xf32>
    %cst_54 = arith.constant 3.200000e+01 : f32
    %180 = vector.broadcast %cst_54 : f32 to vector<16x1xf32>
    %181 = arith.divf %179, %180 : vector<16x1xf32>
    %182 = vector.broadcast %174 : vector<16x1xf32> to vector<16x32xf32>
    %183 = arith.subf %170, %182 : vector<16x32xf32>
    %cst_55 = arith.constant 9.99999974E-6 : f32
    %184 = vector.broadcast %cst_55 : f32 to vector<16x1xf32>
    %185 = arith.addf %181, %184 : vector<16x1xf32>
    %186 = math.rsqrt %185 : vector<16x1xf32>
    %187 = vector.broadcast %186 : vector<16x1xf32> to vector<16x32xf32>
    %188 = arith.mulf %183, %187 : vector<16x32xf32>
    %189 = vector.broadcast %10 : vector<1x32xf32> to vector<16x32xf32>
    %190 = arith.mulf %188, %189 : vector<16x32xf32>
    %191 = vector.broadcast %11 : vector<1x32xf32> to vector<16x32xf32>
    %192 = arith.addf %190, %191 : vector<16x32xf32>
    %c0_56 = arith.constant 0 : index
    %c0_57 = arith.constant 0 : index
    %193 = vector.load %arg7[%c0_56, %c0_57] : memref<16x32xf32, #tpu.memory_space<vmem>>, vector<16x32xf32>
    tpu.vector_store %arg7[%c0_56, %c0_57], %192 {strides = array<i32>} : memref<16x32xf32, #tpu.memory_space<vmem>>, vector<16x32xf32>,
    return
  }
}

</mosaic_0001>

<bundles_post_ra>
// kernel: transformer_encoder_layer.1
= control target key start
LH: loop header
LB: loop body
LE: loop exit
PB: predicated region body
PF: predicated region fallthrough
CT: control target
= control target key end

     0   :  { %12 = vsyncpa [#allocation3], 0  ;;  %s1584_s0 = inlined_call_operand.hbm [shape: f32[16,32], index: 0, kind: input, shape index: {}]   ;;  %s1585_s1 = inlined_call_operand.hbm [shape: f32[16,32], index: 1, kind: input, shape index: {}]   ;;  %s1586_s2 = inlined_call_operand.vmem [shape: f32[64,96], index: 2, kind: input, shape index: {}]   ;;  %s1587_s3 = inlined_call_operand.vmem [shape: f32[32,32], index: 3, kind: input, shape index: {}]   ;;  %s1588_s4 = inlined_call_operand.hbm [shape: f32[32,64], index: 4, kind: input, shape index: {}]   ;;  %s1589_s5 = inlined_call_operand.vmem [shape: f32[64,32], index: 5, kind: input, shape index: {}]   ;;  %s1590_s6 = inlined_call_operand.hbm [shape: f32[10,64], index: 6, kind: input, shape index: {}]   ;;  %s1591_s7 = inlined_call_operand.hbm [shape: f32[16,32], index: 7, kind: output, shape index: {}]  }
   0x1   :  { %13 = vsyncpa [#allocation6], 0 }
   0x2   :  { %14 = vsyncpa [#allocation9], 0 }
   0x3   :  { %15 = vsyncpa [#allocation4], 0  ;;  %s33_s26 = sshll.u32 %s1585_s1, 4  ;;  %s1231_s27 = smov [#allocation5]   ;;  %s34_s26 = int_to_ptr.hbm [resolvable:$true] %s33_s26 }
   0x4   :  { %s35_s28 = sshll.u32 %s1231_s27, 4  ;;  %s20_s8 = sshll.u32 %s1584_s0, 4  ;;  %s36_s28 = int_to_ptr.vmem [resolvable:$true] %s35_s28  ;;  %s21_s8 = int_to_ptr.hbm [resolvable:$true] %s20_s8 }
   0x5   :  { %s1232_s9 = smov 128   ;;  %s1233_s10 = smov 8  }
   0x6   :  { %41 = dma.hbm_to_vmem [thread:$0]  %s34_s26, 256, %s36_s28, [#allocation6], %s1232_s9, %s1232_s9, %s1233_s10  }
   0x7   :  { %s1234_s11 = smov [#allocation2]   ;;  %s50_s1 = sshll.u32 %s1588_s4, 4  ;;  %s51_s1 = int_to_ptr.hbm [resolvable:$true] %s50_s1 }
   0x8   :  { %s22_s12 = sshll.u32 %s1234_s11, 4  ;;  %s65_s16 = sshll.u32 %s1590_s6, 4  ;;  %s23_s12 = int_to_ptr.vmem [resolvable:$true] %s22_s12  ;;  %s66_s16 = int_to_ptr.hbm [resolvable:$true] %s65_s16 }
   0x9   :  { %28 = dma.hbm_to_vmem [thread:$0]  %s21_s8, 256, %s23_s12, [#allocation3], %s1232_s9, %s1232_s9, %s1233_s10  }
   0xa   :  { %s1235_s17 = smov [#allocation7]   ;;  %s1236_s19 = smov [#allocation8]  }
   0xb   :  { %s52_s18 = sshll.u32 %s1235_s17, 4  ;;  %s67_s4 = sshll.u32 %s1236_s19, 4  ;;  %s53_s18 = int_to_ptr.vmem [resolvable:$true] %s52_s18  ;;  %s68_s4 = int_to_ptr.vmem [resolvable:$true] %s67_s4 }
   0xc   :  { %58 = dma.hbm_to_vmem [thread:$0]  %s51_s1, 512, %s53_s18, [#allocation6], %s1232_s9, %s1232_s9, %s1233_s10  }
   0xd   :  { %73 = dma.hbm_to_vmem [thread:$0]  %s66_s16, 256, %s68_s4, [#allocation9], %s1232_s9, %s1232_s9, %s1233_s10  }
   0xe   :  { %1223 = dma.done.wait [#allocation3], 256  }
   0xf   :  { %1224 = vsyncadd [#allocation3], 4294967040 }
  0x10   :  { %1225 = dma.done.wait [#allocation6], 768  }
  0x11   :  { %1226 = vsyncadd [#allocation6], 4294966528 }
  0x12   :  { %1227 = dma.done.wait [#allocation9], 256  }
  0x13   :  { %1228 = vsyncadd [#allocation9], 4294967040  ;;  %v92_v0 = vld [vmem:[#allocation5] sm:$0xff]  ;;  %v114_v1 = vld [vmem:[%s1586_s2 + $0x38] sm:$0xff]  ;;  %s1237_s21 = smov 32   ;;  %vm104_vm0 = vcmask 261120   ;;  %v162_v40 = vlaneseq }
  0x14   :  { %98 = vrot.lane.b32.xlu0 %v92_v0, %s1237_s21  ;;  %130 = vmatpush.msra.mxu0 %v114_v1  ;;  %v113_v2 = vld [vmem:[%s1586_s2 + $0x30] sm:$0xff]  ;;  %v112_v3 = vld [vmem:[%s1586_s2 + $0x28] sm:$0xff]  ;;  %v111_v4 = vld [vmem:[%s1586_s2 + $0x20] sm:$0xff]  ;;  %vm115_vm1 = vcmask 523264   ;;  %s1239_s1 = smov 96   ;;  %s1240_s0 = smov 80  }
  0x15   :  { %v93_v5 = vld [vmem:[#allocation5 + $0x8] sm:$0xff]  ;;  %v109_v7 = vld [vmem:[%s1586_s2 + $0x10] sm:$0xff]  ;;  %v108_v8 = vld [vmem:[%s1586_s2 + $0x8] sm:$0xff]  ;;  %s1241_s15 = smov 72   ;;  %s1242_s16 = smov 120   ;;  %vm211_vm2 = vcmask 64512  }
  0x16   :  { %131 = vmatpush.msra.mxu0 %v113_v2  ;;  %v110_v6 = vld [vmem:[%s1586_s2 + $0x18] sm:$0xff]  ;;  %v107_v9 = vld [vmem:[%s1586_s2] sm:$0xff]  ;;  %v1349_v15 = vld [vmem:[#allocation2 + $0x8] sm:$0xff]  ;;  %s1238_s2 = smov 88   ;;  %s1243_s17 = smov 112   ;;  %v163_v41 = vshrl.u32 %v162_v40, 7 }
  0x17   :  { %v1341_v10 = vld [vmem:[#allocation8] sm:$0xff]  ;;  %s1244_s18 = smov 104   ;;  %v190_v42 = vand.u32 127, %v162_v40  ;;  %vm247_vm4 = vcmask 130048   ;;  %s1245_s19 = smov 64  }
  0x18   :  { %132 = vmatpush.msra.mxu0 %v112_v3  ;;  %v148_v11 = vperm.slane %v1341_v10, 1  ;;  %v1344_v12 = vld [vmem:[#allocation2] sm:$0xff]  ;;  %v145_v23 = vperm.slane %v1341_v10, 0  ;;  %v169_v43 = vand.u32 1, %v163_v41  ;;  %v164_v46 = vadd.s32 8, %v163_v41  ;;  %s1246_s4 = smov 40  }
  0x19   :  { %v195_v44 = vand.u32 1, %v190_v42  ;;  %v155_v3 = vperm.slane %v1341_v10, 2  ;;  %s1247_s6 = smov 56   ;;  %s1248_s20 = smov 48  }
  0x1a   :  { %133 = vmatpush.msra.mxu0 %v111_v4  ;;  %150 = vrot.lane.b32.xlu1 %v148_v11, %s1237_s21  ;;  %v176_v50 = vand.u32 1, %v164_v46  ;;  %s1250_s22 = smov 16   ;;  %s963_s23 = sshll.u32 %s1591_s7, 4  ;;  %s964_s23 = int_to_ptr.hbm [resolvable:$true] %s963_s23 }
  0x1b   :  { %vm1379_vm3 = vcmp.eq.s32.totalorder %v169_v43, %v195_v44 }
  0x1c   :  { %100 = vrot.lane.b32.xlu0 %v93_v5, %s1237_s21  ;;  %134 = vmatpush.msra.mxu0 %v110_v6  ;;  %vm1389_vm5 = vcmp.eq.s32.totalorder %v176_v50, %v195_v44  ;;  %s1249_s21 = smov 24  }
  0x1e   :  { %135 = vmatpush.msra.mxu0 %v109_v7 }
  0x20   :  { %136 = vmatpush.msra.mxu0 %v108_v8 }
  0x22   :  { %137 = vmatpush.msra.mxu0 %v107_v9 }
  0x86   :  { %v99_v13 = vpop.permute.xlu0 %98 }
  0x87   :  { %v105_v14 = vsel %vm104_vm0, %v1344_v12, %v99_v13 }
  0x88   :  { %978 = vmatmul.msk.f32.vlgmr.msra.gmra.mxu0 %vm115_vm1, %v105_v14 }
  0x8c   :  { %v151_v18 = vpop.permute.xlu1 %150 }
  0x8e   :  { %v101_v16 = vpop.permute.xlu0 %100 }
  0x8f   :  { %v106_v17 = vsel %vm104_vm0, %v1349_v15, %v101_v16 }
  0x90   :  { %979 = vmatmul.msk.f32.gmra.mxu0 %vm115_vm1, %v106_v17 }
 0x105   :  { %v1354_v19 = vpop.f32.mrf.mxu0 }
 0x106   :  { %v153_v20 = vadd.f32 %v151_v18, %v1354_v19  ;;  %v146_v25 = vadd.f32 %v145_v23, %v1354_v19 }
 0x108   :  { %337 = vrot.lane.b32.xlu0 %v153_v20, %s1238_s2  ;;  %207 = vrot.lane.b32.xlu2 %v153_v20, %s1239_s1 }
 0x10d   :  { %v1357_v21 = vpop.f32.mrf.mxu0 }
 0x10e   :  { %v154_v22 = vadd.f32 %v151_v18, %v1357_v21  ;;  %v147_v24 = vadd.f32 %v145_v23, %v1357_v21 }
 0x110   :  { %463 = vrot.lane.b32.xlu0 %v154_v22, %s1240_s0  ;;  %339 = vrot.lane.b32.xlu2 %v154_v22, %s1238_s2 }
 0x111   :  { %209 = vrot.lane.b32.xlu1 %v154_v22, %s1239_s1 }
 0x118   :  { %585 = vrot.lane.b32.xlu0 %v153_v20, %s1241_s15  ;;  %335 = vrot.lane.b32.xlu2 %v147_v24, %s1242_s16 }
 0x119   :  { %333 = vrot.lane.b32.xlu1 %v146_v25, %s1242_s16 }
 0x120   :  { %459 = vrot.lane.b32.xlu0 %v147_v24, %s1243_s17  ;;  %461 = vrot.lane.b32.xlu2 %v153_v20, %s1240_s0 }
 0x121   :  { %587 = vrot.lane.b32.xlu1 %v154_v22, %s1241_s15 }
 0x128   :  { %581 = vrot.lane.b32.xlu2 %v146_v25, %s1244_s18 }
 0x129   :  { %457 = vrot.lane.b32.xlu1 %v146_v25, %s1243_s17 }
 0x131   :  { %583 = vrot.lane.b32.xlu1 %v147_v24, %s1244_s18 }
 0x162   :  { %v208_v26 = vpop.permute.xlu2 %207 }
 0x16a   :  { %v340_v27 = vpop.permute.xlu2 %339 }
 0x16b   :  { %986 = vmatpush.xpose.msk.msra.mxu3 %vm211_vm2, %v340_v27 }
 0x172   :  { %v336_v29 = vpop.permute.xlu2 %335 }
 0x17a   :  { %v338_v28 = vpop.permute.xlu0 %337  ;;  %v462_v33 = vpop.permute.xlu2 %461 }
 0x17b   :  { %987 = vmatpush.xpose.msk.msra.mxu3 %vm211_vm2, %v338_v28 }
 0x182   :  { %v464_v31 = vpop.permute.xlu0 %463  ;;  %v582_v36 = vpop.permute.xlu2 %581 }
 0x183   :  { %v210_v30 = vpop.permute.xlu1 %209 }
 0x184   :  { %980 = vmatpush.xpose.msk.msra.mxu1 %vm211_vm2, %v210_v30 }
 0x188   :  { %981 = vmatpush.xpose.msk.msra.mxu1 %vm211_vm2, %v208_v26 }
 0x18a   :  { %v586_v35 = vpop.permute.xlu0 %585 }
 0x18b   :  { %982 = vmatmul.msk.f32.vlgmr.msra.gmra.mxu1 %vm211_vm2, %v146_v25  ;;  %v334_v32 = vpop.permute.xlu1 %333 }
 0x18c   :  { %992 = vmatpush.xpose.msk.msrb.mxu1 %vm211_vm2, %v464_v31  ;;  %988 = vmatmul.msk.f32.vlgmr.msra.gmra.mxu3 %vm211_vm2, %v334_v32 }
 0x190   :  { %993 = vmatpush.xpose.msk.msrb.mxu1 %vm211_vm2, %v462_v33 }
 0x192   :  { %v460_v38 = vpop.permute.xlu0 %459 }
 0x193   :  { %v588_v34 = vpop.permute.xlu1 %587  ;;  %983 = vmatmul.msk.f32.gmra.mxu1 %vm211_vm2, %v147_v24 }
 0x194   :  { %989 = vmatmul.msk.f32.gmra.mxu3 %vm211_vm2, %v336_v29  ;;  %998 = vmatpush.xpose.msk.msrb.mxu0 %vm211_vm2, %v588_v34 }
 0x198   :  { %999 = vmatpush.xpose.msk.msrb.mxu0 %vm211_vm2, %v586_v35 }
 0x19b   :  { %v458_v37 = vpop.permute.xlu1 %457  ;;  %1000 = vmatmul.msk.f32.vlgmr.msrb.gmra.mxu0 %vm211_vm2, %v582_v36 }
 0x19c   :  { %994 = vmatmul.msk.f32.vlgmr.msrb.gmra.mxu1 %vm211_vm2, %v458_v37 }
 0x1a3   :  { %v584_v39 = vpop.permute.xlu1 %583 }
 0x1a4   :  { %995 = vmatmul.msk.f32.gmra.mxu1 %vm211_vm2, %v460_v38  ;;  %1001 = vmatmul.msk.f32.gmra.mxu0 %vm211_vm2, %v584_v39 }
 0x208   :  { %v239_v47 = vpop.f32.mrf.mxu1 }
 0x209   :  { %v1385_v48 = vsel %vm1379_vm3, %v239_v47, -1e+30 }
 0x20a   :  { %v248_v49 = vsel %vm247_vm4, %v1385_v48, -inf }
 0x20b   :  { %249 = vmax.xlane.f32.xlu2 %v248_v49 }
 0x20f   :  { %v366_v52 = vpop.f32.mrf.mxu3 }
 0x210   :  { %v372_v53 = vsel %vm1379_vm3, %v366_v52, -1e+30  ;;  %v242_v54 = vpop.f32.mrf.mxu1 }
 0x211   :  { %v246_v55 = vsel %vm1389_vm5, %v242_v54, -1e+30  ;;  %v374_v56 = vsel %vm247_vm4, %v372_v53, -inf }
 0x212   :  { %375 = vmax.xlane.f32.xlu1 %v374_v56  ;;  %v251_v57 = vsel %vm247_vm4, %v246_v55, -inf }
 0x213   :  { %252 = vmax.xlane.f32.xlu0 %v251_v57 }
 0x217   :  { %v369_v58 = vpop.f32.mrf.mxu3 }
 0x218   :  { %v373_v59 = vsel %vm1389_vm5, %v369_v58, -1e+30  ;;  %v614_v60 = vpop.f32.mrf.mxu0 }
 0x219   :  { %v620_v61 = vsel %vm1379_vm3, %v614_v60, -1e+30  ;;  %v377_v62 = vsel %vm247_vm4, %v373_v59, -inf  ;;  %v490_v32 = vpop.f32.mrf.mxu1 }
 0x21a   :  { %378 = vmax.xlane.f32.xlu2 %v377_v62  ;;  %v622_v63 = vsel %vm247_vm4, %v620_v61, -inf  ;;  %v496_v33 = vsel %vm1379_vm3, %v490_v32, -1e+30 }
 0x21b   :  { %623 = vmax.xlane.f32.xlu1 %v622_v63  ;;  %v498_v35 = vsel %vm247_vm4, %v496_v33, -inf }
 0x221   :  { %v617_v0 = vpop.f32.mrf.mxu0  ;;  %v493_v36 = vpop.f32.mrf.mxu1 }
 0x222   :  { %v621_v1 = vsel %vm1389_vm5, %v617_v0, -1e+30  ;;  %v497_v38 = vsel %vm1389_vm5, %v493_v36, -1e+30 }
 0x223   :  { %v625_v2 = vsel %vm247_vm4, %v621_v1, -inf  ;;  %v501_v39 = vsel %vm247_vm4, %v497_v38, -inf }
 0x224   :  { %626 = vmax.xlane.f32.xlu1 %v625_v2 }
 0x232   :  { %157 = vrot.lane.b32.xlu2 %v155_v3, %s1245_s19 }
 0x27e   :  { %v250_v4 = vpop.xlane.xlu2 %249 }
 0x27f   :  { %v254_v34 = vsub.f32 %v1385_v48, %v250_v4 }
 0x281   :  { %v256_v37 = vmul.f32 1.442695, %v254_v34 }
 0x285   :  { %v376_v5 = vpop.xlane.xlu1 %375 }
 0x286   :  { %v380_v6 = vsub.f32 %v372_v53, %v376_v5  ;;  %v253_v9 = vpop.xlane.xlu0 %252 }
 0x287   :  { %v255_v16 = vsub.f32 %v246_v55, %v253_v9 }
 0x288   :  { %v382_v7 = vmul.f32 1.442695, %v380_v6 }
 0x289   :  { %v258_v20 = vmul.f32 1.442695, %v255_v16 }
 0x28a   :  { %1060 = vpow2.f32 %v382_v7 }
 0x28d   :  { %v379_v8 = vpop.xlane.xlu2 %378 }
 0x28e   :  { %v624_v11 = vpop.xlane.xlu1 %623  ;;  %v381_v27 = vsub.f32 %v373_v59, %v379_v8 }
 0x28f   :  { %v628_v13 = vsub.f32 %v620_v61, %v624_v11 }
 0x290   :  { %v1409_v14 = vpop.eup %1060  ;;  %v384_v29 = vmul.f32 1.442695, %v381_v27 }
 0x291   :  { %v630_v17 = vmul.f32 1.442695, %v628_v13  ;;  %v386_v18 = vsel %vm247_vm4, %v1409_v14, 0.0 }
 0x292   :  { %387 = vadd.xlane.f32.xlu2 %v386_v18 }
 0x293   :  { %1062 = vpow2.f32 %v630_v17 }
 0x294   :  { %1064 = vpow2.f32 %v258_v20 }
 0x295   :  { %v158_v22 = vpop.permute.xlu2 %157  ;;  %1066 = vpow2.f32 %v384_v29 }
 0x296   :  { %v160_v23 = vadd.f32 %v158_v22, %v1354_v19  ;;  %v161_v24 = vadd.f32 %v158_v22, %v1357_v21  ;;  %1068 = vpow2.f32 %v256_v37 }
 0x297   :  { %v627_v42 = vpop.xlane.xlu1 %626 }
 0x298   :  { %v1415_v25 = vpack.i.bf16 %v160_v23, %v161_v24  ;;  %v629_v43 = vsub.f32 %v621_v1, %v627_v42 }
 0x299   :  { %v1417_v26 = vpop.eup %1062 }
 0x29a   :  { %1041 = vrot.lane.b32.xlu0 %v1415_v25, %s1245_s19  ;;  %v634_v28 = vsel %vm247_vm4, %v1417_v26, 0.0  ;;  %v1422_v30 = vpop.eup %1064  ;;  %v632_v44 = vmul.f32 1.442695, %v629_v43 }
 0x29b   :  { %635 = vadd.xlane.f32.xlu1 %v634_v28  ;;  %v263_v19 = vsel %vm247_vm4, %v1422_v30, 0.0  ;;  %v1426_v21 = vpop.eup %1066 }
 0x29c   :  { %v389_v31 = vsel %vm247_vm4, %v1426_v21, 0.0  ;;  %v1438_v40 = vpop.eup %1068  ;;  %1070 = vpow2.f32 %v632_v44 }
 0x29d   :  { %v260_v41 = vsel %vm247_vm4, %v1438_v40, 0.0 }
 0x2a2   :  { %v1443_v47 = vpop.eup %1070 }
 0x2a3   :  { %264 = vadd.xlane.f32.xlu1 %v263_v19  ;;  %v637_v49 = vsel %vm247_vm4, %v1443_v47, 0.0 }
 0x2aa   :  { %1056 = vrot.lane.b32.xlu2 %v1415_v25, %s1246_s4 }
 0x2ab   :  { %390 = vadd.xlane.f32.xlu1 %v389_v31 }
 0x2c4   :  { %499 = vmax.xlane.f32.xlu0 %v498_v35 }
 0x2cc   :  { %502 = vmax.xlane.f32.xlu0 %v501_v39 }
 0x2d4   :  { %261 = vadd.xlane.f32.xlu0 %v260_v41 }
 0x2e8   :  { %1046 = vrot.lane.b32.xlu0 %v1415_v25, %s1247_s6 }
 0x305   :  { %v1453_v60 = vpop.xlane.xlu2 %387 }
 0x306   :  { %v403_v44 = vand.u32 2147483648, %v1453_v60  ;;  %vm397_vm15 = vweird.f32 %v1453_v60 }
 0x30c   :  { %v1042_v45 = vpop.permute.xlu0 %1041 }
 0x30d   :  { %v1043_v46 = vunpack.i.l.bf16 %v1042_v45  ;;  %v1044_v48 = vunpack.i.h.bf16 %v1042_v45 }
 0x30e   :  { %v1447_v50 = vpop.xlane.xlu1 %635 }
 0x30f   :  { %324 = vmatpush.msra.mxu2 %v1043_v46  ;;  %v401_v46 = vand.u32 2147483647, %v1453_v60 }
 0x311   :  { %325 = vmatpush.msra.mxu2 %v1044_v48  ;;  %vm402_vm5 = vcmp.eq.f32.partialorder %v401_v46, 8.507059e+37 }
 0x312   :  { %638 = vadd.xlane.f32.xlu0 %v637_v49 }
 0x316   :  { %v265_v54 = vpop.xlane.xlu1 %264 }
 0x317   :  { %v291_v27 = vand.u32 2147483648, %v265_v54  ;;  %vm285_vm11 = vweird.f32 %v265_v54  ;;  %v289_v19 = vand.u32 2147483647, %v265_v54 }
 0x319   :  { %v292_v37 = vor.u32 1.1754944e-38, %v291_v27  ;;  %vm290_vm13 = vcmp.eq.f32.partialorder %v289_v19, 8.507059e+37 }
 0x31e   :  { %v1462_v5 = vpop.xlane.xlu1 %390 }
 0x337   :  { %v500_v51 = vpop.xlane.xlu0 %499 }
 0x338   :  { %v504_v52 = vsub.f32 %v496_v33, %v500_v51  ;;  %v1057_v33 = vpop.permute.xlu2 %1056 }
 0x339   :  { %v1058_v39 = vunpack.i.l.bf16 %v1057_v33  ;;  %v1059_v45 = vunpack.i.h.bf16 %v1057_v33 }
 0x33a   :  { %v506_v53 = vmul.f32 1.442695, %v504_v52 }
 0x33c   :  { %1072 = vpow2.f32 %v506_v53  ;;  %v404_v53 = vor.u32 1.1754944e-38, %v403_v44 }
 0x33d   :  { %1074 = vrcp.f32 %v265_v54 }
 0x33f   :  { %v503_v55 = vpop.xlane.xlu0 %502 }
 0x340   :  { %v505_v56 = vsub.f32 %v497_v38, %v503_v55 }
 0x342   :  { %v1449_v57 = vpop.eup %1072  ;;  %v508_v58 = vmul.f32 1.442695, %v505_v56 }
 0x343   :  { %v510_v59 = vsel %vm247_vm4, %v1449_v57, 0.0  ;;  %v1075_v62 = vpop.eup %1074 }
 0x344   :  { %1076 = vpow2.f32 %v508_v58  ;;  %511 = vadd.xlane.f32.xlu1 %v510_v59  ;;  %v281_v0 = vmul.f32 %v1075_v62, %v265_v54  ;;  %vm286_vm10 = vweird.f32 %v1075_v62  ;;  %v415_v59 = vand.u32 2147483647, %v1462_v5 }
 0x345   :  { %vm287_vm12 = vmor %vm285_vm11, %vm286_vm10  ;;  %vm645_vm11 = vweird.f32 %v1447_v50 }
 0x346   :  { %v282_v4 = vsub.f32 1.0, %v281_v0 }
 0x347   :  { %v262_v61 = vpop.xlane.xlu0 %261 }
 0x348   :  { %1078 = vrcp.f32 %v262_v61  ;;  %v277_v9 = vand.u32 2147483648, %v262_v61  ;;  %v283_v11 = vmul.f32 %v1075_v62, %v282_v4  ;;  %v275_v16 = vand.u32 2147483647, %v262_v61 }
 0x349   :  { %1080 = vrcp.f32 %v1453_v60  ;;  %vm271_vm7 = vweird.f32 %v262_v61 }
 0x34a   :  { %v1456_v63 = vpop.eup %1076  ;;  %1082 = vrcp.f32 %v1462_v5  ;;  %v278_v20 = vor.u32 1.1754944e-38, %v277_v9  ;;  %vm276_vm9 = vcmp.eq.f32.partialorder %v275_v16, 8.507059e+37  ;;  %v284_v23 = vadd.f32 %v1075_v62, %v283_v11 }
 0x34b   :  { %v513_v1 = vsel %vm247_vm4, %v1456_v63, 0.0  ;;  %1084 = vrcp.f32 %v1447_v50 }
 0x34c   :  { %514 = vadd.xlane.f32.xlu1 %v513_v1  ;;  %v288_v36 = vsel %vm287_vm12, %v1075_v62, %v284_v23  ;;  %v651_v1 = vand.u32 2147483648, %v1447_v50 }
 0x34e   :  { %v1079_v2 = vpop.eup %1078  ;;  %v652_v4 = vor.u32 1.1754944e-38, %v651_v1 }
 0x34f   :  { %v1460_v3 = vpop.eup %1080  ;;  %v267_v6 = vmul.f32 %v1079_v2, %v262_v61  ;;  %vm272_vm6 = vweird.f32 %v1079_v2 }
 0x350   :  { %v393_v8 = vmul.f32 %v1460_v3, %v1453_v60  ;;  %vm273_vm8 = vmor %vm271_vm7, %vm272_vm6  ;;  %v1083_v24 = vpop.eup %1082  ;;  %vm398_vm14 = vweird.f32 %v1460_v3  ;;  %vm411_vm7 = vweird.f32 %v1462_v5 }
 0x351   :  { %v268_v7 = vsub.f32 1.0, %v267_v6  ;;  %v407_v34 = vmul.f32 %v1083_v24, %v1462_v5  ;;  %v1085_v43 = vpop.eup %1084  ;;  %vm399_vm3 = vmor %vm397_vm15, %vm398_vm14  ;;  %vm412_vm6 = vweird.f32 %v1083_v24 }
 0x352   :  { %v394_v18 = vsub.f32 1.0, %v393_v8  ;;  %v641_v49 = vmul.f32 %v1085_v43, %v1447_v50  ;;  %vm646_vm10 = vweird.f32 %v1085_v43 }
 0x353   :  { %v269_v13 = vmul.f32 %v1079_v2, %v268_v7  ;;  %v408_v42 = vsub.f32 1.0, %v407_v34  ;;  %vm647_vm12 = vmor %vm645_vm11, %vm646_vm10 }
 0x354   :  { %v395_v32 = vmul.f32 %v1460_v3, %v394_v18  ;;  %v642_v55 = vsub.f32 1.0, %v641_v49 }
 0x355   :  { %v270_v17 = vadd.f32 %v1079_v2, %v269_v13  ;;  %v409_v51 = vmul.f32 %v1083_v24, %v408_v42 }
 0x356   :  { %v396_v41 = vadd.f32 %v1460_v3, %v395_v32  ;;  %v643_v60 = vmul.f32 %v1085_v43, %v642_v55 }
 0x357   :  { %v274_v22 = vsel %vm273_vm8, %v1079_v2, %v270_v17  ;;  %v410_v56 = vadd.f32 %v1083_v24, %v409_v51  ;;  %vm413_vm8 = vmor %vm411_vm7, %vm412_vm6  ;;  %v649_v2 = vand.u32 2147483647, %v1447_v50 }
 0x358   :  { %v279_v28 = vsel %vm276_vm9, %v278_v20, %v274_v22  ;;  %v400_v52 = vsel %vm399_vm3, %v1460_v3, %v396_v41  ;;  %vm416_vm9 = vcmp.eq.f32.partialorder %v415_v59, 8.507059e+37  ;;  %v644_v0 = vadd.f32 %v1085_v43, %v643_v60  ;;  %v738_v59 = vld [vmem:[%s1587_s3 + $0x10] sm:$0xff]  ;;  %v737_v60 = vld [vmem:[%s1587_s3 + $0x8] sm:$0xff] }
 0x359   :  { %v294_v29 = vmul.f32 %v1438_v40, %v279_v28  ;;  %v293_v40 = vsel %vm290_vm13, %v292_v37, %v288_v36  ;;  %v405_v54 = vsel %vm402_vm5, %v404_v53, %v400_v52  ;;  %v414_v61 = vsel %vm413_vm8, %v1083_v24, %v410_v56 }
 0x35a   :  { %v1047_v31 = vpop.permute.xlu0 %1046  ;;  %v295_v48 = vmul.f32 %v1422_v30, %v293_v40  ;;  %v417_v30 = vand.u32 2147483648, %v1462_v5  ;;  %v420_v58 = vmul.f32 %v1409_v14, %v405_v54  ;;  %v648_v3 = vsel %vm647_vm12, %v1085_v43, %v644_v0 }
 0x35b   :  { %984 = vmatmul.msk.f32.vlgmr.msra.gmra.mxu2 %vm247_vm4, %v294_v29  ;;  %v1048_v35 = vunpack.i.l.bf16 %v1047_v31  ;;  %v1049_v38 = vunpack.i.h.bf16 %v1047_v31  ;;  %vm650_vm13 = vcmp.eq.f32.partialorder %v649_v2, 8.507059e+37 }
 0x35c   :  { %v418_v62 = vor.u32 1.1754944e-38, %v417_v30  ;;  %v653_v5 = vsel %vm650_vm13, %v652_v4, %v648_v3 }
 0x35d   :  { %448 = vmatpush.msrb.mxu2 %v1048_v35  ;;  %v668_v6 = vmul.f32 %v1417_v26, %v653_v5 }
 0x35f   :  { %449 = vmatpush.msrb.mxu2 %v1049_v38 }
 0x361   :  { %696 = vmatpush.msra.mxu2 %v1058_v39 }
 0x363   :  { %697 = vmatpush.msra.mxu2 %v1059_v45 }
 0x364   :  { %985 = vmatmul.msk.f32.gmra.mxu2 %vm247_vm4, %v295_v48 }
 0x365   :  { %1051 = vrot.lane.b32.xlu1 %v1415_v25, %s1248_s20  ;;  %v419_v25 = vsel %vm416_vm9, %v418_v62, %v414_v61  ;;  %v736_v61 = vld [vmem:[%s1587_s3] sm:$0xff] }
 0x366   :  { %v421_v14 = vmul.f32 %v1426_v21, %v419_v25 }
 0x36c   :  { %990 = vmatmul.msk.f32.vlgmr.msrb.gmra.mxu2 %vm247_vm4, %v420_v58 }
 0x374   :  { %991 = vmatmul.msk.f32.gmra.mxu2 %vm247_vm4, %v421_v14 }
 0x37c   :  { %1002 = vmatmul.msk.f32.vlgmr.msra.gmra.mxu2 %vm247_vm4, %v668_v6 }
 0x385   :  { %v639_v7 = vpop.xlane.xlu0 %638 }
 0x386   :  { %1086 = vrcp.f32 %v639_v7  ;;  %v665_v13 = vand.u32 2147483648, %v639_v7  ;;  %v663_v21 = vand.u32 2147483647, %v639_v7  ;;  %vm659_vm15 = vweird.f32 %v639_v7 }
 0x388   :  { %v666_v17 = vor.u32 1.1754944e-38, %v665_v13  ;;  %vm664_vm5 = vcmp.eq.f32.partialorder %v663_v21, 8.507059e+37 }
 0x38c   :  { %v1087_v8 = vpop.eup %1086 }
 0x38d   :  { %v655_v9 = vmul.f32 %v1087_v8, %v639_v7  ;;  %vm660_vm14 = vweird.f32 %v1087_v8 }
 0x38e   :  { %vm661_vm3 = vmor %vm659_vm15, %vm660_vm14  ;;  %vm733_vm14 = vcmask 195584  }
 0x38f   :  { %v656_v11 = vsub.f32 1.0, %v655_v9  ;;  %v740_v9 = vperm.slane %v1341_v10, 3 }
 0x391   :  { %v657_v50 = vmul.f32 %v1087_v8, %v656_v11 }
 0x393   :  { %v658_v16 = vadd.f32 %v1087_v8, %v657_v50 }
 0x395   :  { %v662_v18 = vsel %vm661_vm3, %v1087_v8, %v658_v16 }
 0x396   :  { %v667_v20 = vsel %vm664_vm5, %v666_v17, %v662_v18 }
 0x397   :  { %v669_v26 = vmul.f32 %v1443_v47, %v667_v20 }
 0x399   :  { %1003 = vmatmul.msk.f32.gmra.mxu2 %vm247_vm4, %v669_v26  ;;  %v1251_v26 = vmov 32.0  }
 0x3b7   :  { %v512_v22 = vpop.xlane.xlu1 %511 }
 0x3b8   :  { %1088 = vrcp.f32 %v512_v22  ;;  %v527_v34 = vand.u32 2147483648, %v512_v22  ;;  %vm521_vm7 = vweird.f32 %v512_v22  ;;  %v525_v35 = vand.u32 2147483647, %v512_v22 }
 0x3ba   :  { %v528_v37 = vor.u32 1.1754944e-38, %v527_v34  ;;  %vm526_vm9 = vcmp.eq.f32.partialorder %v525_v35, 8.507059e+37 }
 0x3be   :  { %v1089_v24 = vpop.eup %1088 }
 0x3bf   :  { %v515_v23 = vpop.xlane.xlu1 %514  ;;  %v517_v27 = vmul.f32 %v1089_v24, %v512_v22  ;;  %vm522_vm6 = vweird.f32 %v1089_v24 }
 0x3c0   :  { %1090 = vrcp.f32 %v515_v23  ;;  %vm523_vm8 = vmor %vm521_vm7, %vm522_vm6  ;;  %v541_v42 = vand.u32 2147483648, %v515_v23  ;;  %vm535_vm11 = vweird.f32 %v515_v23  ;;  %v539_v45 = vand.u32 2147483647, %v515_v23 }
 0x3c1   :  { %v518_v28 = vsub.f32 1.0, %v517_v27  ;;  %1092 = vrcp.f32 %v1251_v26 }
 0x3c2   :  { %v542_v48 = vor.u32 1.1754944e-38, %v541_v42  ;;  %vm540_vm13 = vcmp.eq.f32.partialorder %v539_v45, 8.507059e+37  ;;  %v871_v45 = vld [vmem:[%s1589_s5 + $0x30] sm:$0xff] }
 0x3c3   :  { %v519_v19 = vmul.f32 %v1089_v24, %v518_v28 }
 0x3c5   :  { %v520_v32 = vadd.f32 %v1089_v24, %v519_v19 }
 0x3c6   :  { %v1091_v29 = vpop.eup %1090 }
 0x3c7   :  { %v531_v31 = vmul.f32 %v1091_v29, %v515_v23  ;;  %v524_v36 = vsel %vm523_vm8, %v1089_v24, %v520_v32  ;;  %vm536_vm10 = vweird.f32 %v1091_v29  ;;  %v1093_v22 = vpop.eup %1092 }
 0x3c8   :  { %v529_v40 = vsel %vm526_vm9, %v528_v37, %v524_v36  ;;  %vm537_vm12 = vmor %vm535_vm11, %vm536_vm10  ;;  %v779_v23 = vmul.f32 32.0, %v1093_v22  ;;  %v832_v37 = vld [vmem:[#allocation7 + $0x18] sm:$0xff] }
 0x3c9   :  { %v532_v33 = vsub.f32 1.0, %v531_v31  ;;  %v544_v44 = vmul.f32 %v1449_v57, %v529_v40  ;;  %v829_v40 = vld [vmem:[#allocation7] sm:$0xff] }
 0x3ca   :  { %v780_v24 = vsub.f32 1.0, %v779_v23  ;;  %v873_v23 = vperm.slane %v1341_v10, 6 }
 0x3cb   :  { %v533_v47 = vmul.f32 %v1091_v29, %v532_v33 }
 0x3cc   :  { %v781_v27 = vmul.f32 %v1093_v22, %v780_v24 }
 0x3cd   :  { %v534_v41 = vadd.f32 %v1091_v29, %v533_v47 }
 0x3ce   :  { %v782_v28 = vadd.f32 %v1093_v22, %v781_v27 }
 0x3cf   :  { %v538_v46 = vsel %vm537_vm12, %v1091_v29, %v534_v41 }
 0x3d0   :  { %v543_v51 = vsel %vm540_vm13, %v542_v48, %v538_v46  ;;  %v870_v46 = vld [vmem:[%s1589_s5 + $0x28] sm:$0xff] }
 0x3d1   :  { %v545_v52 = vmul.f32 %v1456_v63, %v543_v51  ;;  %v739_v63 = vld [vmem:[%s1587_s3 + $0x18] sm:$0xff]  ;;  %v869_v51 = vld [vmem:[%s1589_s5 + $0x20] sm:$0xff] }
 0x3d2   :  { %759 = vmatpush.msra.mxu1 %v739_v63 }
 0x3d4   :  { %760 = vmatpush.msra.mxu1 %v738_v59 }
 0x3d6   :  { %761 = vmatpush.msra.mxu1 %v737_v60  ;;  %v823_v60 = vperm.slane %v1341_v10, 4 }
 0x3d7   :  { %v1052_v38 = vpop.permute.xlu1 %1051 }
 0x3d8   :  { %v1053_v39 = vunpack.i.l.bf16 %v1052_v38  ;;  %v1054_v43 = vunpack.i.h.bf16 %v1052_v38  ;;  %762 = vmatpush.msra.mxu1 %v736_v61  ;;  %v831_v38 = vld [vmem:[#allocation7 + $0x10] sm:$0xff] }
 0x3da   :  { %572 = vmatpush.msrb.mxu3 %v1053_v39  ;;  %v830_v39 = vld [vmem:[#allocation7 + $0x8] sm:$0xff] }
 0x3dc   :  { %573 = vmatpush.msrb.mxu3 %v1054_v43 }
 0x3dd   :  { %996 = vmatmul.msk.f32.vlgmr.msrb.gmra.mxu3 %vm247_vm4, %v544_v44  ;;  %v872_v44 = vld [vmem:[%s1589_s5 + $0x38] sm:$0xff] }
 0x3de   :  { %v327_v49 = vpop.f32.mrf.mxu2  ;;  %852 = vmatpush.msra.mxu3 %v832_v37  ;;  %888 = vmatpush.msra.mxu0 %v872_v44 }
 0x3df   :  { %1010 = vmatpush.msrb.mxu2 %v872_v44 }
 0x3e0   :  { %853 = vmatpush.msra.mxu3 %v831_v38  ;;  %889 = vmatpush.msra.mxu0 %v871_v45 }
 0x3e1   :  { %1011 = vmatpush.msrb.mxu2 %v871_v45 }
 0x3e2   :  { %854 = vmatpush.msra.mxu3 %v830_v39  ;;  %890 = vmatpush.msra.mxu0 %v870_v46 }
 0x3e3   :  { %1012 = vmatpush.msrb.mxu2 %v870_v46 }
 0x3e4   :  { %855 = vmatpush.msra.mxu3 %v829_v40  ;;  %891 = vmatpush.msra.mxu0 %v869_v51 }
 0x3e5   :  { %997 = vmatmul.msk.f32.gmra.mxu3 %vm247_vm4, %v545_v52  ;;  %1013 = vmatpush.msrb.mxu2 %v869_v51 }
 0x3e7   :  { %v330_v53 = vpop.f32.mrf.mxu2 }
 0x3ef   :  { %v451_v54 = vpop.f32.mrf.mxu2 }
 0x3f0   :  { %707 = vrot.lane.b32.xlu1 %v451_v54, %s1233_s10  ;;  %v868_v54 = vld [vmem:[%s1589_s5 + $0x18] sm:$0xff] }
 0x3f1   :  { %892 = vmatpush.msra.mxu0 %v868_v54  ;;  %1014 = vmatpush.msrb.mxu2 %v868_v54 }
 0x3f7   :  { %v454_v55 = vpop.f32.mrf.mxu2 }
 0x3f8   :  { %709 = vrot.lane.b32.xlu0 %v454_v55, %s1233_s10 }
 0x3ff   :  { %v699_v57 = vpop.f32.mrf.mxu2 }
 0x400   :  { %723 = vrot.lane.b32.xlu1 %v699_v57, %s1249_s21 }
 0x41c   :  { %v702_v56 = vpop.f32.mrf.mxu2 }
 0x41d   :  { %725 = vrot.lane.b32.xlu1 %v702_v56, %s1249_s21 }
 0x460   :  { %v575_v30 = vpop.f32.mrf.mxu3 }
 0x461   :  { %715 = vrot.lane.b32.xlu2 %v575_v30, %s1250_s22 }
 0x462   :  { %v708_v62 = vpop.permute.xlu1 %707 }
 0x463   :  { %v729_v25 = vsel %vm211_vm2, %v327_v49, %v708_v62 }
 0x468   :  { %v578_v58 = vpop.f32.mrf.mxu3 }
 0x469   :  { %717 = vrot.lane.b32.xlu2 %v578_v58, %s1250_s22 }
 0x46a   :  { %v710_v3 = vpop.permute.xlu0 %709 }
 0x46b   :  { %v730_v4 = vsel %vm211_vm2, %v330_v53, %v710_v3  ;;  %vm783_vm2 = vweird.f32 %v1093_v22 }
 0x46c   :  { %v1525_v29 = vsel %vm783_vm2, %v1093_v22, %v782_v28 }
 0x472   :  { %v724_v1 = vpop.permute.xlu1 %723 }
 0x48f   :  { %v726_v6 = vpop.permute.xlu1 %725 }
 0x4bb   :  { %v716_v0 = vpop.permute.xlu2 %715 }
 0x4bc   :  { %v731_v2 = vsel %vm247_vm4, %v729_v25, %v716_v0  ;;  %v826_v0 = vperm.slane %v1341_v10, 5 }
 0x4bd   :  { %v734_v14 = vsel %vm733_vm14, %v731_v2, %v724_v1 }
 0x4be   :  { %1004 = vmatmul.msk.f32.vlgmr.msra.gmra.mxu1 %vm104_vm0, %v734_v14 }
 0x4c3   :  { %v718_v5 = vpop.permute.xlu2 %717 }
 0x4c4   :  { %v732_v7 = vsel %vm247_vm4, %v730_v4, %v718_v5 }
 0x4c5   :  { %v735_v8 = vsel %vm733_vm14, %v732_v7, %v726_v6 }
 0x4c6   :  { %1005 = vmatmul.msk.f32.gmra.mxu1 %vm104_vm0, %v735_v8 }
 0x53b   :  { %v764_v11 = vpop.f32.mrf.mxu1 }
 0x53c   :  { %v765_v13 = vadd.f32 %v764_v11, %v740_v9  ;;  %v866_v11 = vld [vmem:[%s1589_s5 + $0x8] sm:$0xff] }
 0x53e   :  { %v770_v50 = vadd.f32 %v765_v13, %v1344_v12  ;;  %v865_v13 = vld [vmem:[%s1589_s5] sm:$0xff] }
 0x540   :  { %v772_v21 = vsel %vm104_vm0, %v770_v50, 0.0 }
 0x541   :  { %773 = vadd.xlane.f32.xlu2 %v772_v21 }
 0x543   :  { %v767_v16 = vpop.f32.mrf.mxu1 }
 0x544   :  { %v768_v17 = vadd.f32 %v767_v16, %v740_v9  ;;  %v867_v9 = vld [vmem:[%s1589_s5 + $0x10] sm:$0xff]  ;;  %s1252_s5 = smov [#allocation10]  }
 0x545   :  { %893 = vmatpush.msra.mxu0 %v867_v9  ;;  %1015 = vmatpush.msrb.mxu2 %v867_v9  ;;  %s961_s20 = sshll.u32 %s1252_s5, 4  ;;  %s962_s20 = int_to_ptr.vmem [resolvable:$true] %s961_s20 }
 0x546   :  { %v771_v18 = vadd.f32 %v768_v17, %v1349_v15 }
 0x547   :  { %894 = vmatpush.msra.mxu0 %v866_v11  ;;  %1016 = vmatpush.msrb.mxu2 %v866_v11 }
 0x548   :  { %v775_v20 = vsel %vm104_vm0, %v771_v18, 0.0 }
 0x549   :  { %776 = vadd.xlane.f32.xlu1 %v775_v20  ;;  %895 = vmatpush.msra.mxu0 %v865_v13 }
 0x54a   :  { %1017 = vmatpush.msrb.mxu2 %v865_v13 }
 0x5b4   :  { %v774_v12 = vpop.xlane.xlu2 %773 }
 0x5b5   :  { %v785_v19 = vmul.f32 %v1525_v29, %v774_v12 }
 0x5b7   :  { %v787_v31 = vsub.f32 %v770_v50, %v785_v19  ;;  %v1561_v50 = vld [vmem:[#allocation8 + $0x8] sm:$0x3] }
 0x5b8   :  { %v833_v21 = vperm.slane %v1561_v50, 1 }
 0x5b9   :  { %v789_v32 = vmul.f32 %v787_v31, %v787_v31 }
 0x5bb   :  { %v791_v15 = vsel %vm104_vm0, %v789_v32, 0.0 }
 0x5bc   :  { %792 = vadd.xlane.f32.xlu0 %v791_v15  ;;  %v777_v33 = vpop.xlane.xlu1 %776 }
 0x5bd   :  { %v786_v34 = vmul.f32 %v1525_v29, %v777_v33 }
 0x5bf   :  { %v788_v35 = vsub.f32 %v771_v18, %v786_v34 }
 0x5c1   :  { %v790_v47 = vmul.f32 %v788_v35, %v788_v35 }
 0x5c3   :  { %v794_v36 = vsel %vm104_vm0, %v790_v47, 0.0 }
 0x5c4   :  { %795 = vadd.xlane.f32.xlu2 %v794_v36 }
 0x62f   :  { %v793_v41 = vpop.xlane.xlu0 %792 }
 0x630   :  { %v797_v42 = vmul.f32 %v793_v41, %v1525_v29 }
 0x632   :  { %v799_v43 = vadd.f32 1e-05, %v797_v42 }
 0x634   :  { %1094 = vrsqrt.f32 %v799_v43  ;;  %vm807_vm15 = vweird.f32 %v799_v43 }
 0x637   :  { %v796_v48 = vpop.xlane.xlu2 %795 }
 0x638   :  { %v798_v49 = vmul.f32 %v796_v48, %v1525_v29 }
 0x63a   :  { %v1095_v52 = vpop.eup %1094  ;;  %v800_v53 = vadd.f32 1e-05, %v798_v49 }
 0x63b   :  { %v802_v55 = vmul.f32 %v1095_v52, %v799_v43  ;;  %vm808_vm4 = vweird.f32 %v1095_v52 }
 0x63c   :  { %1096 = vrsqrt.f32 %v800_v53  ;;  %vm809_vm3 = vmor %vm807_vm15, %vm808_vm4  ;;  %vm817_vm6 = vweird.f32 %v800_v53 }
 0x63d   :  { %v803_v57 = vmul.f32 %v1095_v52, %v802_v55  ;;  %v1102_v55 = vld [vmem:[#allocation8] sm:$0xff] }
 0x63f   :  { %v804_v56 = vmul.f32 0.5, %v803_v57  ;;  %v949_v57 = vperm.slane %v1102_v55, 7 }
 0x641   :  { %v805_v30 = vsub.f32 1.5, %v804_v56 }
 0x642   :  { %v1097_v58 = vpop.eup %1096 }
 0x643   :  { %v806_v63 = vmul.f32 %v1095_v52, %v805_v30  ;;  %v812_v59 = vmul.f32 %v1097_v58, %v800_v53  ;;  %vm818_vm5 = vweird.f32 %v1097_v58  ;;  %v952_v30 = vperm.slane %v1561_v50, 0 }
 0x644   :  { %vm819_vm7 = vmor %vm817_vm6, %vm818_vm5 }
 0x645   :  { %v810_v61 = vsel %vm809_vm3, %v1095_v52, %v806_v63  ;;  %v813_v62 = vmul.f32 %v1097_v58, %v812_v59 }
 0x646   :  { %v821_v25 = vmul.f32 %v810_v61, %v787_v31 }
 0x647   :  { %v814_v1 = vmul.f32 0.5, %v813_v62 }
 0x648   :  { %v824_v2 = vmul.f32 %v823_v60, %v821_v25 }
 0x649   :  { %v815_v14 = vsub.f32 1.5, %v814_v1 }
 0x64a   :  { %v827_v3 = vadd.f32 %v826_v0, %v824_v2 }
 0x64b   :  { %v816_v4 = vmul.f32 %v1097_v58, %v815_v14 }
 0x64c   :  { %1006 = vmatmul.msk.f32.vlgmr.msra.gmra.mxu3 %vm104_vm0, %v827_v3 }
 0x64d   :  { %v820_v5 = vsel %vm819_vm7, %v1097_v58, %v816_v4 }
 0x64e   :  { %v822_v6 = vmul.f32 %v820_v5, %v788_v35 }
 0x650   :  { %v825_v7 = vmul.f32 %v823_v60, %v822_v6 }
 0x652   :  { %v828_v8 = vadd.f32 %v826_v0, %v825_v7 }
 0x654   :  { %1007 = vmatmul.msk.f32.gmra.mxu3 %vm104_vm0, %v828_v8 }
 0x6cf   :  { %v857_v16 = vpop.f32.mrf.mxu3 }
 0x6d0   :  { %v858_v17 = vadd.f32 %v857_v16, %v833_v21 }
 0x6d2   :  { %v863_v18 = vmax.f32 %v858_v17, 0.0 }
 0x6d4   :  { %1008 = vmatmul.msk.f32.vlgmr.msra.gmra.mxu0 %vm115_vm1, %v863_v18 }
 0x6d7   :  { %v860_v20 = vpop.f32.mrf.mxu3 }
 0x6d8   :  { %v861_v26 = vadd.f32 %v860_v20, %v833_v21 }
 0x6da   :  { %v864_v22 = vmax.f32 %v861_v26, 0.0 }
 0x6dc   :  { %1009 = vmatmul.msk.f32.vlgmr.msrb.gmra.mxu2 %vm115_vm1, %v864_v22 }
 0x751   :  { %v897_v24 = vpop.f32.mrf.mxu0 }
 0x752   :  { %v898_v27 = vadd.f32 %v897_v24, %v873_v23 }
 0x754   :  { %v903_v28 = vadd.f32 %v898_v27, %v827_v3 }
 0x756   :  { %v905_v12 = vsel %vm104_vm0, %v903_v28, 0.0 }
 0x757   :  { %906 = vadd.xlane.f32.xlu1 %v905_v12 }
 0x75f   :  { %v900_v19 = vpop.f32.mrf.mxu2 }
 0x760   :  { %v901_v31 = vadd.f32 %v900_v19, %v873_v23 }
 0x762   :  { %v904_v32 = vadd.f32 %v901_v31, %v828_v8 }
 0x764   :  { %v908_v15 = vsel %vm104_vm0, %v904_v32, 0.0 }
 0x765   :  { %909 = vadd.xlane.f32.xlu2 %v908_v15 }
 0x7ca   :  { %v907_v33 = vpop.xlane.xlu1 %906 }
 0x7cb   :  { %v911_v34 = vmul.f32 %v907_v33, %v1525_v29 }
 0x7cd   :  { %v913_v35 = vsub.f32 %v903_v28, %v911_v34 }
 0x7cf   :  { %v915_v47 = vmul.f32 %v913_v35, %v913_v35 }
 0x7d1   :  { %v917_v36 = vsel %vm104_vm0, %v915_v47, 0.0 }
 0x7d2   :  { %918 = vadd.xlane.f32.xlu1 %v917_v36 }
 0x7d8   :  { %v910_v10 = vpop.xlane.xlu2 %909 }
 0x7d9   :  { %v912_v37 = vmul.f32 %v910_v10, %v1525_v29 }
 0x7db   :  { %v914_v38 = vsub.f32 %v904_v32, %v912_v37 }
 0x7dd   :  { %v916_v39 = vmul.f32 %v914_v38, %v914_v38 }
 0x7df   :  { %v920_v40 = vsel %vm104_vm0, %v916_v39, 0.0 }
 0x7e0   :  { %921 = vadd.xlane.f32.xlu0 %v920_v40 }
 0x845   :  { %v919_v41 = vpop.xlane.xlu1 %918 }
 0x846   :  { %v923_v42 = vmul.f32 %v919_v41, %v1525_v29 }
 0x848   :  { %v925_v43 = vadd.f32 1e-05, %v923_v42 }
 0x84a   :  { %1098 = vrsqrt.f32 %v925_v43  ;;  %vm933_vm8 = vweird.f32 %v925_v43 }
 0x850   :  { %v1099_v44 = vpop.eup %1098 }
 0x851   :  { %v928_v45 = vmul.f32 %v1099_v44, %v925_v43  ;;  %vm934_vm1 = vweird.f32 %v1099_v44 }
 0x852   :  { %vm935_vm9 = vmor %vm933_vm8, %vm934_vm1 }
 0x853   :  { %v929_v46 = vmul.f32 %v1099_v44, %v928_v45  ;;  %v922_v48 = vpop.xlane.xlu0 %921 }
 0x854   :  { %v924_v49 = vmul.f32 %v922_v48, %v1525_v29 }
 0x855   :  { %v930_v51 = vmul.f32 0.5, %v929_v46 }
 0x856   :  { %v926_v52 = vadd.f32 1e-05, %v924_v49 }
 0x857   :  { %v931_v53 = vsub.f32 1.5, %v930_v51 }
 0x858   :  { %1100 = vrsqrt.f32 %v926_v52  ;;  %vm943_vm11 = vweird.f32 %v926_v52 }
 0x859   :  { %v932_v54 = vmul.f32 %v1099_v44, %v931_v53 }
 0x85b   :  { %v936_v56 = vsel %vm935_vm9, %v1099_v44, %v932_v54 }
 0x85c   :  { %v947_v58 = vmul.f32 %v936_v56, %v913_v35 }
 0x85e   :  { %v1101_v63 = vpop.eup %1100  ;;  %v950_v59 = vmul.f32 %v949_v57, %v947_v58 }
 0x85f   :  { %v938_v60 = vmul.f32 %v1101_v63, %v926_v52  ;;  %vm944_vm10 = vweird.f32 %v1101_v63 }
 0x860   :  { %v953_v61 = vadd.f32 %v952_v30, %v950_v59  ;;  %vm945_vm12 = vmor %vm943_vm11, %vm944_vm10 }
 0x861   :  { %v939_v62 = vmul.f32 %v1101_v63, %v938_v60 }
 0x862   :  { %955 = vst.msk [vmem:[#allocation10] sm:$0xff] %vm104_vm0, %v953_v61 }
 0x863   :  { %v940_v29 = vmul.f32 0.5, %v939_v62 }
 0x865   :  { %v941_v25 = vsub.f32 1.5, %v940_v29 }
 0x867   :  { %v942_v0 = vmul.f32 %v1101_v63, %v941_v25 }
 0x869   :  { %v946_v1 = vsel %vm945_vm12, %v1101_v63, %v942_v0 }
 0x86a   :  { %v948_v2 = vmul.f32 %v946_v1, %v914_v38 }
 0x86c   :  { %v951_v14 = vmul.f32 %v949_v57, %v948_v2 }
 0x86e   :  { %v954_v3 = vadd.f32 %v952_v30, %v951_v14 }
 0x870   :  { %956 = vst.msk [vmem:[#allocation10 + $0x8] sm:$0xff] %vm104_vm0, %v954_v3 }
 0x871   :  { %969 = dma.vmem_to_hbm [thread:$0]  %s962_s20, 256, %s964_s23, [#allocation4], %s1232_s9, %s1232_s9, %s1233_s10  }
 0x872   :  { %1229 = dma.done.wait [#allocation4], 256  }
 0x873   :  { %1230 = vsyncadd [#allocation4], 4294967040 }
 0x874   :  { %974 = vsyncpa [#allocation3], 1 }
 0x875   :  { %975 = vsyncpa [#allocation6], 1 }
 0x876   :  { %976 = vsyncpa [#allocation9], 1 }
 0x877   :  { %977 = vsyncpa [#allocation4], 1 }

</bundles_post_ra>
